<compile_context>
chip_gen: v6e
topology: v6e:2x2x1
jax: 0.10.0
libtpu: 0.0.40
codegen_flags: <defaults>
</compile_context>

<pallas_src>
import functools

import jax
import jax.numpy as jnp
from jax.experimental import pallas as pl
from jax.experimental.pallas import tpu as pltpu


def ieblock_kernel(x_ref, w1_ref, b1_ref, w2_ref, b2_ref,
                   wct_ref, bc_ref, wo_ref, bo_ref, out_ref, *, bt, n):
    """Feature-major IEBlock on a (feat, Bt*N) slab (one batch tile per step).

    Features sit on sublanes, (batch, node) is flattened onto the lane axis,
    so every feature projection is a single wide row-major 2-D matmul and the
    output store is lane-dense.
    """
    x = x_ref[...]                                                    # (Din, Bt*N)

    # spatial_proj: Linear(Din->H) -> LeakyReLU(0.01) -> Linear(H->H4),
    # each as one wide matmul over the whole batch tile.
    h0 = jnp.dot(w1_ref[...], x, preferred_element_type=jnp.float32) + b1_ref[...]
    h1 = jnp.where(h0 >= 0, h0, jnp.float32(0.01) * h0)
    h = jnp.dot(w2_ref[...], h1.astype(w2_ref.dtype),
                preferred_element_type=jnp.float32) + b2_ref[...]     # (H4, Bt*N)

    # channel mix over the node axis: block-diagonal in the batch, so the
    # (H4, N) @ (N, N) contraction is done per batch via static lane slices.
    wct = wct_ref[...]                                                # (N, N) == Wc.T
    hc = h.astype(wct.dtype)
    chunks = [
        jnp.dot(hc[:, b * n:(b + 1) * n], wct, preferred_element_type=jnp.float32)
        for b in range(bt)
    ]
    ch = chunks[0] if bt == 1 else jnp.concatenate(chunks, axis=1)    # (H4, Bt*N)
    g = h + ch + bc_ref[...]                                          # bc pre-tiled (1, Bt*N)

    # output_proj: Linear(H4 -> Dout); single wide matmul, lane-dense store.
    y = jnp.dot(wo_ref[...], g.astype(wo_ref.dtype),
                preferred_element_type=jnp.float32) + bo_ref[...]     # (Dout, Bt*N)
    out_ref[...] = y.astype(out_ref.dtype)


def _min_grid_steps_for_device():
    # v7x has 2 TensorCores/chip: keep >= 2 grid steps so the "parallel" batch
    # axis can shard across them. v5e/v6e (1 TC) prefer fewest, biggest steps.
    try:
        kind = jax.devices()[0].device_kind.lower()
    except Exception:
        return 1
    return 2 if "v7" in kind else 1


def _pick_batch_tile(batch, num_node, min_steps=1, max_tile=32):
    """Largest Bt with B % Bt == 0 such that the slab's lane extent Bt*N is
    128-aligned (or the block covers the whole lane extent, Bt == B).
    Prefers leaving >= min_steps grid steps and a bounded channel-mix unroll."""
    cands = [bt for bt in range(1, batch + 1)
             if batch % bt == 0 and ((bt * num_node) % 128 == 0 or bt == batch)]
    for need_steps, need_cap in ((True, True), (False, True),
                                 (True, False), (False, False)):
        pool = [bt for bt in cands
                if (not need_steps or batch // bt >= min_steps)
                and (not need_cap or bt <= max_tile)]
        if pool:
            return max(pool)
    return batch


def ieblock_forward(x, params, compute_dtype=None, batch_tile=None,
                    feature_major_out=False):
    """x: (B, input_dim, num_node) -> (B, output_dim, num_node). PyTorch semantics.

    compute_dtype: optional matmul-input dtype (e.g. jnp.bfloat16, fine on
    v5e/v6e/v7x); accumulation and elementwise math stay f32, output keeps
    x.dtype. feature_major_out=True skips the final wrapper transpose and
    returns the lane-dense (Dout, B, N) layout directly.
    """
    w1, b1, w2, b2, wc, bc, wo, bo = params
    B, Din, N = x.shape
    H = w1.shape[0]
    H4 = w2.shape[0]
    Dout = wo.shape[0]
    out_dtype = x.dtype

    Bt = batch_tile if batch_tile is not None else _pick_batch_tile(
        B, N, min_steps=_min_grid_steps_for_device())
    assert B % Bt == 0, (B, Bt)
    lanes = Bt * N
    assert lanes % 128 == 0 or Bt == B, (
        "batch tile must give a 128-aligned lane extent or cover the whole batch",
        Bt, N)

    # One-time prep outside the kernel (plain HBM passes handled by XLA):
    #  * x in feature-major slab layout (Din, B*N): column (b, n) = x[b, :, n]
    #  * Wc pre-transposed; biases shaped/tiled ((feat,1) columns, (1,Bt*N) row)
    #    so nothing needs an in-kernel relayout.
    x2 = jnp.transpose(x, (1, 0, 2)).reshape(Din, B * N)
    wct = wc.T
    b1c = b1.reshape(H, 1).astype(jnp.float32)
    b2c = b2.reshape(H4, 1).astype(jnp.float32)
    bct = jnp.tile(bc.reshape(1, N).astype(jnp.float32), (1, Bt))     # (1, Bt*N)
    boc = bo.reshape(Dout, 1).astype(jnp.float32)

    if compute_dtype is not None:
        # bf16 matmul inputs are fine on every generation (including v5e): the
        # MXU takes bf16 natively and all elementwise math stays f32.
        x2 = x2.astype(compute_dtype)
        w1c = w1.astype(compute_dtype)
        w2c = w2.astype(compute_dtype)
        wct = wct.astype(compute_dtype)
        woc = wo.astype(compute_dtype)
    else:
        w1c, w2c, woc = w1, w2, wo

    # VMEM budget: single-buffered weights + double-buffered x/out tiles +
    # f32 intermediates of one step, with generous headroom.
    itemsize = x2.dtype.itemsize
    weight_bytes = sum(int(a.size) * a.dtype.itemsize
                       for a in (w1c, b1c, w2c, b2c, wct, bct, woc, boc))
    io_bytes = 2 * lanes * (Din * itemsize + Dout * jnp.dtype(out_dtype).itemsize)
    act_bytes = 4 * lanes * (2 * H + 3 * H4 + Dout)
    vmem_limit = int(min(max(2 * (weight_bytes + io_bytes + act_bytes) + (2 << 20),
                             16 << 20),
                         100 << 20))
    # NOTE: for num_node in the thousands (N*N f32 weight approaching VMEM
    # capacity, esp. v7x's 64 MiB), the channel weight should additionally be
    # streamed in (N, Nt) blocks over a second grid axis; not needed at these
    # sizes, vmem_limit_bytes guards the current footprint.

    flops = 2 * B * N * (Din * H + H * H4 + H4 * N + H4 * Dout)
    bytes_accessed = (int(x2.size) * itemsize
                      + B * Dout * N * jnp.dtype(out_dtype).itemsize
                      + weight_bytes)

    def _const_spec(shape):
        # Constant operands: fetched once and kept single-buffered (halves the
        # resident footprint of the (N, N) channel weight vs. the default 2).
        return pl.BlockSpec(shape, lambda i: (0, 0), pipeline_mode=pl.Buffered(1))

    kernel = functools.partial(ieblock_kernel, bt=Bt, n=N)

    out2 = pl.pallas_call(
        kernel,
        out_shape=jax.ShapeDtypeStruct((Dout, B * N), out_dtype),
        grid_spec=pltpu.PrefetchScalarGridSpec(
            num_scalar_prefetch=0,
            grid=(B // Bt,),
            in_specs=[
                pl.BlockSpec((Din, lanes), lambda i: (0, i)),         # x slab tile
                _const_spec((H, Din)), _const_spec((H, 1)),           # spatial_proj[0]
                _const_spec((H4, H)), _const_spec((H4, 1)),           # spatial_proj[2]
                _const_spec((N, N)), _const_spec((1, lanes)),         # channel_proj (Wc.T)
                _const_spec((Dout, H4)), _const_spec((Dout, 1)),      # output_proj
            ],
            out_specs=pl.BlockSpec((Dout, lanes), lambda i: (0, i)),
        ),
        compiler_params=pltpu.CompilerParams(
            dimension_semantics=("parallel",),
            vmem_limit_bytes=vmem_limit,
        ),
        cost_estimate=pl.CostEstimate(
            flops=flops, transcendentals=0, bytes_accessed=bytes_accessed),
    )(x2, w1c, b1c, w2c, b2c, wct, bct, woc, boc)

    out3 = out2.reshape(Dout, B, N)
    if feature_major_out:
        return out3                                     # (Dout, B, N), lane-dense
    return jnp.transpose(out3, (1, 0, 2))               # (B, Dout, N), PyTorch layout


def ieblock_ref(x, params):
    """Pure-JAX reference mirroring the PyTorch forward exactly."""
    w1, b1, w2, b2, wc, bc, wo, bo = params
    xt = jnp.transpose(x, (0, 2, 1))             # (B, N, Din)
    h0 = xt @ w1.T + b1
    h1 = jnp.where(h0 >= 0, h0, 0.01 * h0)
    h = h1 @ w2.T + b2                           # (B, N, H4)
    h_t = jnp.transpose(h, (0, 2, 1))            # (B, H4, N)
    g_t = h_t + (h_t @ wc.T + bc)                # channel_proj over node dim
    g = jnp.transpose(g_t, (0, 2, 1))            # (B, N, H4)
    y = g @ wo.T + bo                            # (B, N, Dout)
    return jnp.transpose(y, (0, 2, 1))           # (B, Dout, N)


def init_params(key, input_dim, hid_dim, output_dim, num_node):
    h4 = hid_dim // 4
    ks = jax.random.split(key, 8)
    scale = 0.1
    w1 = scale * jax.random.normal(ks[0], (hid_dim, input_dim), jnp.float32)
    b1 = scale * jax.random.normal(ks[1], (hid_dim,), jnp.float32)
    w2 = scale * jax.random.normal(ks[2], (h4, hid_dim), jnp.float32)
    b2 = scale * jax.random.normal(ks[3], (h4,), jnp.float32)
    wc = jnp.eye(num_node, dtype=jnp.float32)    # torch.nn.init.eye_(channel_proj.weight)
    bc = scale * jax.random.normal(ks[4], (num_node,), jnp.float32)
    wo = scale * jax.random.normal(ks[5], (output_dim, h4), jnp.float32)
    bo = scale * jax.random.normal(ks[6], (output_dim,), jnp.float32)
    return (w1, b1, w2, b2, wc, bc, wo, bo)


if __name__ == "__main__":
    # Small, forward-consistent shapes.
    B, input_dim, hid_dim, output_dim, num_node = 4, 16, 32, 8, 16

    key = jax.random.PRNGKey(0)
    kx, kp = jax.random.split(key)
    x = jax.random.normal(kx, (B, input_dim, num_node), jnp.float32)
    params = init_params(kp, input_dim, hid_dim, output_dim, num_node)

    y_ref = ieblock_ref(x, params)

    # Default f32 path.
    y = jax.block_until_ready(ieblock_forward(x, params))
    assert y.shape == (B, output_dim, num_node), y.shape
    assert jnp.allclose(y, y_ref, atol=1e-5, rtol=1e-5), "f32 kernel mismatch vs reference"

    # bf16 matmul-input path (valid on v5e/v6e/v7x) with f32 accumulation.
    y_bf16 = jax.block_until_ready(
        ieblock_forward(x, params, compute_dtype=jnp.bfloat16))
    assert y_bf16.shape == (B, output_dim, num_node), y_bf16.shape
    assert jnp.allclose(y_bf16, y_ref, atol=3e-2, rtol=3e-2), "bf16 kernel mismatch vs reference"

    print("KERNEL_OK")
</pallas_src>

<mosaic_0001>
module attributes {stable_mosaic.version = 11 : i64} {
  func.func @ieblock_kernel(%arg0: i32, %arg1: memref<16x64xf32, #tpu.memory_space<vmem>>, %arg2: memref<32x16xf32, #tpu.memory_space<vmem>>, %arg3: memref<32x1xf32, #tpu.memory_space<vmem>>, %arg4: memref<8x32xf32, #tpu.memory_space<vmem>>, %arg5: memref<8x1xf32, #tpu.memory_space<vmem>>, %arg6: memref<16x16xf32, #tpu.memory_space<vmem>>, %arg7: memref<1x64xf32, #tpu.memory_space<vmem>>, %arg8: memref<8x8xf32, #tpu.memory_space<vmem>>, %arg9: memref<8x1xf32, #tpu.memory_space<vmem>>, %arg10: memref<8x64xf32, #tpu.memory_space<vmem>>) attributes {dimension_semantics = [#tpu.dimension_semantics<parallel>], iteration_bounds = array<i64: 1>, scalar_prefetch = 0 : i64, scratch_operands = 0 : i64, tpu.core_type = #tpu.core_type<tc>, window_params = [{transform_indices = @transform_0, window_bounds = array<i64: 16, 64>}, {pipeline_mode = #tpu.pipeline_mode<synchronous>, transform_indices = @transform_1, window_bounds = array<i64: 32, 16>}, {pipeline_mode = #tpu.pipeline_mode<synchronous>, transform_indices = @transform_2, window_bounds = array<i64: 32, 1>}, {pipeline_mode = #tpu.pipeline_mode<synchronous>, transform_indices = @transform_3, window_bounds = array<i64: 8, 32>}, {pipeline_mode = #tpu.pipeline_mode<synchronous>, transform_indices = @transform_4, window_bounds = array<i64: 8, 1>}, {pipeline_mode = #tpu.pipeline_mode<synchronous>, transform_indices = @transform_5, window_bounds = array<i64: 16, 16>}, {pipeline_mode = #tpu.pipeline_mode<synchronous>, transform_indices = @transform_6, window_bounds = array<i64: 1, 64>}, {pipeline_mode = #tpu.pipeline_mode<synchronous>, transform_indices = @transform_7, window_bounds = array<i64: 8, 8>}, {pipeline_mode = #tpu.pipeline_mode<synchronous>, transform_indices = @transform_8, window_bounds = array<i64: 8, 1>}, {transform_indices = @transform_9, window_bounds = array<i64: 8, 64>}]} {
    %c0 = arith.constant 0 : index
    %c0_0 = arith.constant 0 : index
    %0 = vector.load %arg1[%c0, %c0_0] : memref<16x64xf32, #tpu.memory_space<vmem>>, vector<16x64xf32>
    %c0_1 = arith.constant 0 : index
    %c0_2 = arith.constant 0 : index
    %1 = vector.load %arg2[%c0_1, %c0_2] : memref<32x16xf32, #tpu.memory_space<vmem>>, vector<32x16xf32>
    %cst = arith.constant dense<0.000000e+00> : vector<32x64xf32>
    %2 = tpu.matmul %1, %0, %cst {dimension_numbers = #tpu.dot_dimension_numbers<[1], [0], [0], [1], [0, 0, 1, 1], [], []>} : vector<32x16xf32>, vector<16x64xf32>, vector<32x64xf32> -> vector<32x64xf32>
    %c0_3 = arith.constant 0 : index
    %c0_4 = arith.constant 0 : index
    %3 = vector.load %arg3[%c0_3, %c0_4] : memref<32x1xf32, #tpu.memory_space<vmem>>, vector<32x1xf32>
    %4 = vector.broadcast %3 : vector<32x1xf32> to vector<32x64xf32>
    %5 = arith.addf %2, %4 : vector<32x64xf32>
    %cst_5 = arith.constant 0.000000e+00 : f32
    %6 = vector.broadcast %cst_5 : f32 to vector<32x64xf32>
    %7 = arith.cmpf oge, %5, %6 : vector<32x64xf32>
    %cst_6 = arith.constant 0.00999999977 : f32
    %8 = vector.broadcast %cst_6 : f32 to vector<32x64xf32>
    %9 = arith.mulf %8, %5 : vector<32x64xf32>
    %10 = arith.select %7, %5, %9 : vector<32x64xi1>, vector<32x64xf32>
    %c0_7 = arith.constant 0 : index
    %c0_8 = arith.constant 0 : index
    %11 = vector.load %arg4[%c0_7, %c0_8] : memref<8x32xf32, #tpu.memory_space<vmem>>, vector<8x32xf32>
    %cst_9 = arith.constant dense<0.000000e+00> : vector<8x64xf32>
    %12 = tpu.matmul %11, %10, %cst_9 {dimension_numbers = #tpu.dot_dimension_numbers<[1], [0], [0], [1], [0, 0, 1, 1], [], []>} : vector<8x32xf32>, vector<32x64xf32>, vector<8x64xf32> -> vector<8x64xf32>
    %c0_10 = arith.constant 0 : index
    %c0_11 = arith.constant 0 : index
    %13 = vector.load %arg5[%c0_10, %c0_11] : memref<8x1xf32, #tpu.memory_space<vmem>>, vector<8x1xf32>
    %14 = vector.broadcast %13 : vector<8x1xf32> to vector<8x64xf32>
    %15 = arith.addf %12, %14 : vector<8x64xf32>
    %c0_12 = arith.constant 0 : index
    %c0_13 = arith.constant 0 : index
    %16 = vector.load %arg6[%c0_12, %c0_13] : memref<16x16xf32, #tpu.memory_space<vmem>>, vector<16x16xf32>
    %17 = vector.extract_strided_slice %15 {offsets = [0, 0], sizes = [8, 16], strides = [1, 1]} : vector<8x64xf32> to vector<8x16xf32>
    %cst_14 = arith.constant dense<0.000000e+00> : vector<8x16xf32>
    %18 = tpu.matmul %17, %16, %cst_14 {dimension_numbers = #tpu.dot_dimension_numbers<[1], [0], [0], [1], [0, 0, 1, 1], [], []>} : vector<8x16xf32>, vector<16x16xf32>, vector<8x16xf32> -> vector<8x16xf32>
    %19 = vector.extract_strided_slice %15 {offsets = [0, 16], sizes = [8, 16], strides = [1, 1]} : vector<8x64xf32> to vector<8x16xf32>
    %cst_15 = arith.constant dense<0.000000e+00> : vector<8x16xf32>
    %20 = tpu.matmul %19, %16, %cst_15 {dimension_numbers = #tpu.dot_dimension_numbers<[1], [0], [0], [1], [0, 0, 1, 1], [], []>} : vector<8x16xf32>, vector<16x16xf32>, vector<8x16xf32> -> vector<8x16xf32>
    %21 = vector.extract_strided_slice %15 {offsets = [0, 32], sizes = [8, 16], strides = [1, 1]} : vector<8x64xf32> to vector<8x16xf32>
    %cst_16 = arith.constant dense<0.000000e+00> : vector<8x16xf32>
    %22 = tpu.matmul %21, %16, %cst_16 {dimension_numbers = #tpu.dot_dimension_numbers<[1], [0], [0], [1], [0, 0, 1, 1], [], []>} : vector<8x16xf32>, vector<16x16xf32>, vector<8x16xf32> -> vector<8x16xf32>
    %23 = vector.extract_strided_slice %15 {offsets = [0, 48], sizes = [8, 16], strides = [1, 1]} : vector<8x64xf32> to vector<8x16xf32>
    %cst_17 = arith.constant dense<0.000000e+00> : vector<8x16xf32>
    %24 = tpu.matmul %23, %16, %cst_17 {dimension_numbers = #tpu.dot_dimension_numbers<[1], [0], [0], [1], [0, 0, 1, 1], [], []>} : vector<8x16xf32>, vector<16x16xf32>, vector<8x16xf32> -> vector<8x16xf32>
    %25 = tpu.concatenate %18, %20, %22, %24 in 1 : vector<8x16xf32>, vector<8x16xf32>, vector<8x16xf32>, vector<8x16xf32> -> vector<8x64xf32>
    %26 = arith.addf %15, %25 : vector<8x64xf32>
    %c0_18 = arith.constant 0 : index
    %c0_19 = arith.constant 0 : index
    %27 = vector.load %arg7[%c0_18, %c0_19] : memref<1x64xf32, #tpu.memory_space<vmem>>, vector<1x64xf32>
    %28 = vector.broadcast %27 : vector<1x64xf32> to vector<8x64xf32>
    %29 = arith.addf %26, %28 : vector<8x64xf32>
    %c0_20 = arith.constant 0 : index
    %c0_21 = arith.constant 0 : index
    %30 = vector.load %arg8[%c0_20, %c0_21] : memref<8x8xf32, #tpu.memory_space<vmem>>, vector<8x8xf32>
    %cst_22 = arith.constant dense<0.000000e+00> : vector<8x64xf32>
    %31 = tpu.matmul %30, %29, %cst_22 {dimension_numbers = #tpu.dot_dimension_numbers<[1], [0], [0], [1], [0, 0, 1, 1], [], []>} : vector<8x8xf32>, vector<8x64xf32>, vector<8x64xf32> -> vector<8x64xf32>
    %c0_23 = arith.constant 0 : index
    %c0_24 = arith.constant 0 : index
    %32 = vector.load %arg9[%c0_23, %c0_24] : memref<8x1xf32, #tpu.memory_space<vmem>>, vector<8x1xf32>
    %33 = vector.broadcast %32 : vector<8x1xf32> to vector<8x64xf32>
    %34 = arith.addf %31, %33 : vector<8x64xf32>
    %c0_25 = arith.constant 0 : index
    %c0_26 = arith.constant 0 : index
    %35 = vector.load %arg10[%c0_25, %c0_26] : memref<8x64xf32, #tpu.memory_space<vmem>>, vector<8x64xf32>
    tpu.vector_store %arg10[%c0_25, %c0_26], %34 {strides = array<i32>} : memref<8x64xf32, #tpu.memory_space<vmem>>, vector<8x64xf32>,
    return
  }
  func.func @transform_0(%arg0: i32) -> (i32, i32) {
    %c0_i32 = arith.constant 0 : i32
    %c0_i32_0 = arith.constant 0 : i32
    return %c0_i32, %arg0 : i32, i32
  }
  func.func @transform_1(%arg0: i32) -> (i32, i32) {
    %c0_i32 = arith.constant 0 : i32
    %c0_i32_0 = arith.constant 0 : i32
    %c0_i32_1 = arith.constant 0 : i32
    return %c0_i32, %c0_i32_0 : i32, i32
  }
  func.func @transform_2(%arg0: i32) -> (i32, i32) {
    %c0_i32 = arith.constant 0 : i32
    %c0_i32_0 = arith.constant 0 : i32
    %c0_i32_1 = arith.constant 0 : i32
    return %c0_i32, %c0_i32_0 : i32, i32
  }
  func.func @transform_3(%arg0: i32) -> (i32, i32) {
    %c0_i32 = arith.constant 0 : i32
    %c0_i32_0 = arith.constant 0 : i32
    %c0_i32_1 = arith.constant 0 : i32
    return %c0_i32, %c0_i32_0 : i32, i32
  }
  func.func @transform_4(%arg0: i32) -> (i32, i32) {
    %c0_i32 = arith.constant 0 : i32
    %c0_i32_0 = arith.constant 0 : i32
    %c0_i32_1 = arith.constant 0 : i32
    return %c0_i32, %c0_i32_0 : i32, i32
  }
  func.func @transform_5(%arg0: i32) -> (i32, i32) {
    %c0_i32 = arith.constant 0 : i32
    %c0_i32_0 = arith.constant 0 : i32
    %c0_i32_1 = arith.constant 0 : i32
    return %c0_i32, %c0_i32_0 : i32, i32
  }
  func.func @transform_6(%arg0: i32) -> (i32, i32) {
    %c0_i32 = arith.constant 0 : i32
    %c0_i32_0 = arith.constant 0 : i32
    %c0_i32_1 = arith.constant 0 : i32
    return %c0_i32, %c0_i32_0 : i32, i32
  }
  func.func @transform_7(%arg0: i32) -> (i32, i32) {
    %c0_i32 = arith.constant 0 : i32
    %c0_i32_0 = arith.constant 0 : i32
    %c0_i32_1 = arith.constant 0 : i32
    return %c0_i32, %c0_i32_0 : i32, i32
  }
  func.func @transform_8(%arg0: i32) -> (i32, i32) {
    %c0_i32 = arith.constant 0 : i32
    %c0_i32_0 = arith.constant 0 : i32
    %c0_i32_1 = arith.constant 0 : i32
    return %c0_i32, %c0_i32_0 : i32, i32
  }
  func.func @transform_9(%arg0: i32) -> (i32, i32) {
    %c0_i32 = arith.constant 0 : i32
    %c0_i32_0 = arith.constant 0 : i32
    return %c0_i32, %arg0 : i32, i32
  }
}

</mosaic_0001>

<bundles_post_ra>
// kernel: tpu_custom_call.1
= control target key start
LH: loop header
LB: loop body
LE: loop exit
PB: predicated region body
PF: predicated region fallthrough
CT: control target
= control target key end

     0   :  { %vm63_vm0 = vcmask 130048   ;;  %v797_v4 = vmov 0   ;;  %s947_s0 = inlined_call_operand.vmem [shape: f32[16,64], index: 0, kind: input, shape index: {}]   ;;  %s948_s1 = inlined_call_operand.vmem [shape: f32[32,16], index: 1, kind: input, shape index: {}]   ;;  %s949_s2 = inlined_call_operand.vmem [shape: f32[32,1], index: 2, kind: input, shape index: {}]   ;;  %s950_s3 = inlined_call_operand.vmem [shape: f32[8,32], index: 3, kind: input, shape index: {}]   ;;  %s951_s4 = inlined_call_operand.vmem [shape: f32[8,1], index: 4, kind: input, shape index: {}]   ;;  %s952_s5 = inlined_call_operand.vmem [shape: f32[16,16], index: 5, kind: input, shape index: {}]   ;;  %s953_s6 = inlined_call_operand.vmem [shape: f32[1,64], index: 6, kind: input, shape index: {}]   ;;  %s954_s7 = inlined_call_operand.vmem [shape: f32[8,8], index: 7, kind: input, shape index: {}]   ;;  %s955_s8 = inlined_call_operand.vmem [shape: f32[8,1], index: 8, kind: input, shape index: {}]   ;;  %s956_s9 = inlined_call_operand.hbm [shape: f32[8,64], index: 9, kind: output, shape index: {}]  }
   0x1   :  { %v34_v0 = vld [vmem:[%s947_s0 + $0x8] sm:$0xff]  ;;  %v33_v1 = vld [vmem:[%s947_s0] sm:$0xff]  ;;  %773 = vset.pattern.permute.xlu0 %v797_v4  ;;  %v42_v5 = vld [vmem:[%s949_s2 + $0x18] sm:$0xff] }
   0x2   :  { %v35_v2 = vld [vmem:[%s948_s1] sm:$0xff]  ;;  %709 = vmatprep.subr.mxu0 %v34_v0  ;;  %v36_v3 = vld [vmem:[%s948_s1 + $0x8] sm:$0xff]  ;;  %v37_v7 = vld [vmem:[%s948_s1 + $0x10] sm:$0xff]  ;;  %60 = vperm.xlu0 %773, %v42_v5  }
   0x3   :  { %713 = vmatprep.mubr.msk.f32.mxu0 %vm63_vm0, %v35_v2  ;;  %710 = vmatpush3.msra.mxu0 %v34_v0  ;;  %v40_v6 = vld [vmem:[%s949_s2 + $0x8] sm:$0xff] }
   0x4   :  { %711 = vmatprep.subr.mxu0 %v33_v1 }
   0x5   :  { %14 = vsyncpa [#allocation3], 0  ;;  %712 = vmatpush3.msra.mxu0 %v33_v1  ;;  %774 = vset.pattern.permute.xlu1 %v797_v4  ;;  %v41_v8 = vld [vmem:[%s949_s2 + $0x10] sm:$0xff]  ;;  %v38_v9 = vld [vmem:[%s948_s1 + $0x18] sm:$0xff]  ;;  %v798_v12 = vmov 0.0   ;;  %vm799_vm1 = vmmov 0  }
   0x6   :  { %714 = vmatmul.mubr.msk.f32.vlgmr.msra.gmra.mxu0 %vm63_vm0, %v36_v3  ;;  %50 = vperm.xlu1 %774, %v40_v6   ;;  %v39_v10 = vld [vmem:[%s949_s2] sm:$0xff]  ;;  %vm180_vm6 = vcmask 261120   ;;  %v255_v34 = vld [vmem:[%s952_s5 + $0x8] sm:$0xff]  ;;  %s800_s11 = smov 96   ;;  %s801_s12 = smov 112   ;;  %vm565_vm7 = vcmask 392192  }
   0x7   :  { %716 = vmatprep.mubr.msk.f32.mxu0 %vm63_vm0, %v37_v7  ;;  %55 = vperm.xlu0 %773, %v41_v8   ;;  %v174_v11 = vld [vmem:[%s951_s4] sm:$0xff]  ;;  %s803_s13 = smov 32   ;;  %s804_s14 = smov 16   ;;  %vm583_vm8 = vcmask 64512   ;;  %vm657_vm9 = vcmask 523264  }
   0x8   :  { %719 = vmatprep.subr.mxu1 %v798_v12  ;;  %730 = vmatprep.subr.mxu0 %v798_v12  ;;  %v173_v32 = vld [vmem:[%s950_s3] sm:$0xff]  ;;  %s805_s17 = smov 48   ;;  %s806_s20 = smov [#allocation2]  }
   0x9   :  { %727 = vmatprep.mubr.msk.f32.mxu1 %vm799_vm1, %v798_v12  ;;  %731 = vmatpush3.msra.mxu0 %v255_v34  ;;  %v254_v35 = vld [vmem:[%s952_s5] sm:$0xff]  ;;  %s802_s5 = smov 80   ;;  %s665_s21 = sshll.u32 %s806_s20, 4  ;;  %s666_s21 = int_to_ptr.vmem [resolvable:$true] %s665_s21 }
   0xa   :  { %717 = vmatmul.mubr.msk.f32.gmra.mxu0 %vm63_vm0, %v38_v9  ;;  %45 = vperm.xlu1 %774, %v39_v10   ;;  %v577_v49 = vld [vmem:[%s955_s8] sm:$0xff]  ;;  %p780_p1 = scmp.lt.s32.totalorder %s666_s21, %s666_s21 }
   0xb   :  { %177 = vperm.xlu0 %773, %v174_v11   ;;  %734 = vmatprep.mubr.msk.f32.mxu0 %vm799_vm1, %v798_v12  ;;  %v682_v57 = vld [vmem:[%s953_s6] ss:$0 sm:$0xff]  ;;  %s775_s6 = scalar_lea.vmem %s666_s21, 128 }
   0xc   :  { %732 = vmatprep.subr.mxu0 %v798_v12  ;;  %v576_v61 = vld [vmem:[%s954_s7] sm:$0xff]  ;;  %p776_p0 = scmp.ne.s32.totalorder %s666_s21, %s775_s6  ;;  %p781_p2 = scmp.lt.s32.totalorder %s775_s6, %s775_s6 }
   0xd   :  { %733 = vmatpush3.msra.mxu0 %v254_v35 }
   0xe   :  { %744 = vmatprep.subr.mxu0 %v798_v12  ;;  %p782_p3 = por %p781_p2, %p780_p1 }
  0x10   :  { %p783_p4 = pnand %p782_p3, %p776_p0 }
  0x7d   :  { %v61_v14 = vpop.permute.xlu0 %60 }
  0x81   :  { %v51_v13 = vpop.permute.xlu1 %50 }
  0x82   :  { %v56_v21 = vpop.permute.xlu0 %55 }
  0x85   :  { %v46_v17 = vpop.permute.xlu1 %45 }
  0x86   :  { %v178_v36 = vpop.permute.xlu0 %177 }
  0xc6   :  { %v715_v15 = vpop.f32.mrf.mxu0 }
  0xc7   :  { %v148_v19 = vadd.f32 %v715_v15, %v51_v13 }
  0xc8   :  { %v142_v16 = vpop.f32.mrf.mxu0 }
  0xc9   :  { %v143_v23 = vadd.f32 %v142_v16, %v46_v17  ;;  %v166_v26 = vmul.f32 0.01, %v148_v19  ;;  %vm162_vm4 = vcmp.ge.f32.partialorder %v148_v19, 0.0 }
  0xca   :  { %v718_v18 = vpop.f32.mrf.mxu0 }
  0xcb   :  { %v158_v20 = vadd.f32 %v718_v18, %v61_v14  ;;  %v165_v29 = vmul.f32 0.01, %v143_v23  ;;  %vm161_vm5 = vcmp.ge.f32.partialorder %v143_v23, 0.0  ;;  %v170_v31 = vsel %vm162_vm4, %v148_v19, %v166_v26 }
  0xcc   :  { %v152_v22 = vpop.f32.mrf.mxu0 }
  0xcd   :  { %v153_v24 = vadd.f32 %v152_v22, %v56_v21  ;;  %vm164_vm2 = vcmp.ge.f32.partialorder %v158_v20, 0.0  ;;  %v168_v25 = vmul.f32 0.01, %v158_v20  ;;  %v169_v33 = vsel %vm161_vm5, %v143_v23, %v165_v29 }
  0xcf   :  { %v167_v27 = vmul.f32 0.01, %v153_v24  ;;  %v172_v28 = vsel %vm164_vm2, %v158_v20, %v168_v25  ;;  %vm163_vm3 = vcmp.ge.f32.partialorder %v153_v24, 0.0 }
  0xd0   :  { %720 = vmatpush3.msra.mxu1 %v172_v28 }
  0xd1   :  { %721 = vmatprep.subr.mxu1 %v798_v12  ;;  %v171_v30 = vsel %vm163_vm3, %v153_v24, %v167_v27 }
  0xd2   :  { %722 = vmatpush3.msra.mxu1 %v171_v30 }
  0xd3   :  { %723 = vmatprep.subr.mxu1 %v798_v12 }
  0xd4   :  { %724 = vmatpush3.msra.mxu1 %v170_v31 }
  0xd5   :  { %725 = vmatprep.subr.mxu1 %v798_v12 }
  0xd6   :  { %726 = vmatpush3.msra.mxu1 %v169_v33 }
  0xd7   :  { %728 = vmatmul.mubr.msk.f32.vlgmr.msra.gmra.mxu1 %vm180_vm6, %v173_v32  ;;  %737 = vmatprep.subr.mxu1 %v798_v12 }
  0xd8   :  { %741 = vmatprep.mubr.msk.f32.mxu1 %vm799_vm1, %v798_v12  ;;  %738 = vmatpush3.msra.mxu1 %v255_v34 }
  0xd9   :  { %739 = vmatprep.subr.mxu1 %v798_v12 }
  0xda   :  { %740 = vmatpush3.msra.mxu1 %v254_v35 }
  0xdb   :  { %751 = vmatprep.subr.mxu1 %v798_v12 }
 0x197   :  { %v250_v37 = vpop.f32.mrf.mxu1 }
 0x198   :  { %v251_v38 = vadd.f32 %v250_v37, %v178_v36 }
 0x199   :  { %v729_v39 = vpop.f32.mrf.mxu1 }
 0x19a   :  { %403 = vrot.lane.b32.xlu0 %v251_v38, %s800_s11  ;;  %329 = vrot.lane.b32.xlu1 %v251_v38, %s801_s12 }
 0x19b   :  { %735 = vmatmul.mubr.msk.f32.vlgmr.msra.gmra.mxu0 %vm63_vm0, %v251_v38 }
 0x19c   :  { %745 = vmatpush3.msra.mxu0 %v255_v34  ;;  %748 = vmatprep.mubr.msk.f32.mxu0 %vm799_vm1, %v798_v12 }
 0x19d   :  { %746 = vmatprep.subr.mxu0 %v798_v12 }
 0x19e   :  { %477 = vrot.lane.b32.xlu1 %v251_v38, %s802_s5  ;;  %747 = vmatpush3.msra.mxu0 %v254_v35 }
 0x19f   :  { %758 = vmatprep.subr.mxu0 %v798_v12 }
 0x20c   :  { %v404_v40 = vpop.permute.xlu0 %403  ;;  %v330_v41 = vpop.permute.xlu1 %329 }
 0x20d   :  { %742 = vmatmul.mubr.msk.f32.vlgmr.msra.gmra.mxu1 %vm63_vm0, %v330_v41  ;;  %749 = vmatmul.mubr.msk.f32.vlgmr.msra.gmra.mxu0 %vm63_vm0, %v404_v40 }
 0x20e   :  { %752 = vmatpush3.msra.mxu1 %v255_v34  ;;  %755 = vmatprep.mubr.msk.f32.mxu1 %vm799_vm1, %v798_v12 }
 0x20f   :  { %753 = vmatprep.subr.mxu1 %v798_v12  ;;  %760 = vmatprep.mubr.msk.f32.mxu0 %vm799_vm1, %v798_v12 }
 0x210   :  { %754 = vmatpush3.msra.mxu1 %v254_v35  ;;  %v478_v42 = vpop.permute.xlu1 %477 }
 0x211   :  { %756 = vmatmul.mubr.msk.f32.vlgmr.msra.gmra.mxu1 %vm63_vm0, %v478_v42 }
 0x25b   :  { %v325_v43 = vpop.f32.mrf.mxu0 }
 0x25d   :  { %v736_v44 = vpop.f32.mrf.mxu0 }
 0x2cd   :  { %v399_v45 = vpop.f32.mrf.mxu1  ;;  %v473_v46 = vpop.f32.mrf.mxu0 }
 0x2ce   :  { %556 = vrot.lane.b32.xlu1 %v473_v46, %s803_s13  ;;  %552 = vrot.lane.b32.xlu0 %v399_v45, %s804_s14 }
 0x2cf   :  { %v743_v47 = vpop.f32.mrf.mxu1  ;;  %v750_v48 = vpop.f32.mrf.mxu0 }
 0x2d1   :  { %v547_v50 = vpop.f32.mrf.mxu1 }
 0x2d2   :  { %580 = vperm.xlu1 %774, %v577_v49   ;;  %560 = vrot.lane.b32.xlu0 %v547_v50, %s805_s17 }
 0x2d3   :  { %v757_v51 = vpop.f32.mrf.mxu1 }
 0x340   :  { %v553_v52 = vpop.permute.xlu0 %552  ;;  %v557_v53 = vpop.permute.xlu1 %556 }
 0x341   :  { %v563_v54 = vsel %vm63_vm0, %v325_v43, %v553_v52 }
 0x342   :  { %v564_v55 = vsel %vm180_vm6, %v563_v54, %v557_v53 }
 0x344   :  { %v561_v56 = vpop.permute.xlu0 %560 }
 0x345   :  { %v566_v58 = vsel %vm565_vm7, %v564_v55, %v561_v56 }
 0x346   :  { %v567_v59 = vadd.f32 %v566_v58, %v251_v38 }
 0x348   :  { %v575_v60 = vadd.f32 %v682_v57, %v567_v59 }
 0x34a   :  { %759 = vmatpush3.msra.mxu0 %v575_v60 }
 0x34b   :  { %761 = vmatmul.mubr.msk.f32.vlgmr.msra.gmra.mxu0 %vm583_vm8, %v576_v61 }
 0x34d   :  { %v581_v62 = vpop.permute.xlu1 %580 }
 0x40b   :  { %v653_v63 = vpop.f32.mrf.mxu0 }
 0x40c   :  { %v654_v0 = vadd.f32 %v653_v63, %v581_v62 }
 0x40d   :  { %v762_v1 = vpop.f32.mrf.mxu0 }
 0x40e   :  { %658 = vst.msk [vmem:[#allocation2] sm:$0xff] %vm657_vm9, %v654_v0 }
 0x40f   :  { %786 = shalt.err (!%p783_p4)
}
 0x410   :  { %668 = dma.vmem_to_hbm [thread:$0]  %s666_s21, 128, %s956_s9, [#allocation3]  }
 0x411   :  { %795 = dma.done.wait [#allocation3], 128  }
 0x412   :  { %796 = vsyncadd [#allocation3], 4294967168 }
 0x413   :  { %672 = vsyncpa [#allocation3], 1 }

</bundles_post_ra>
